<compile_context>
chip_gen: v5e
topology: v5e:2x2
jax: 0.10.0
libtpu: 0.0.40
codegen_flags: <defaults>
</compile_context>

<pallas_src>
import jax
import jax.numpy as jnp
from jax.experimental import pallas as pl
from jax.experimental.pallas import tpu as pltpu


def bpr_kernel(cust_t_ref, art_t_ref, cidx_ref, ai_idx_ref, aj_idx_ref, out_ref):
    """Fused gather (one-hot MXU matmul) + elementwise mul + sublane reduce + sigmoid."""
    f32 = jnp.float32
    nc = cust_t_ref.shape[1]
    na = art_t_ref.shape[1]
    tb = cidx_ref.shape[1]

    cust_t = cust_t_ref[...].astype(f32)   # (F, Nc)  resident in VMEM
    art_t = art_t_ref[...].astype(f32)     # (F, Na)

    # One-hot selection matrices, shape (count, tb): column b has a 1 at row idx[b].
    # Gather-as-matmul is exact since the mask entries are exactly 0.0 / 1.0.
    row_c = jax.lax.broadcasted_iota(jnp.int32, (nc, tb), 0)
    row_a = jax.lax.broadcasted_iota(jnp.int32, (na, tb), 0)
    sel_c = (row_c == cidx_ref[...]).astype(f32)       # (Nc, tb)
    sel_i = (row_a == ai_idx_ref[...]).astype(f32)     # (Na, tb)
    sel_j = (row_a == aj_idx_ref[...]).astype(f32)     # (Na, tb)

    hi = jax.lax.Precision.HIGHEST
    c = jnp.dot(cust_t, sel_c, precision=hi, preferred_element_type=f32)   # (F, tb)
    ai = jnp.dot(art_t, sel_i, precision=hi, preferred_element_type=f32)   # (F, tb)
    aj = jnp.dot(art_t, sel_j, precision=hi, preferred_element_type=f32)   # (F, tb)

    # Batch sits on lanes -> the reduction over F is a cheap sublane accumulation
    # and the (1, tb) results are already lane-dense.
    pred_i = jnp.sum(c * ai, axis=0, keepdims=True)    # (1, tb)
    pred_j = jnp.sum(c * aj, axis=0, keepdims=True)    # (1, tb)

    out_ref[...] = jax.nn.sigmoid(
        jnp.concatenate([pred_i, pred_j], axis=0)).astype(out_ref.dtype)


def nn_model_forward(embed_customer, embed_article,
                     customer, article_i, article_j, *, tb=512):
    """NNModel forward. Embedding gather, dot product and sigmoid all run inside
    one Pallas kernel; only the tiny (count, F) tables and the int32 index
    vectors are read from HBM."""
    B = customer.shape[0]
    Nc, F = embed_customer.shape
    Na, _ = embed_article.shape
    dtype = embed_customer.dtype

    # Pre-transpose the (tiny) tables so gathered slabs come out (F, tb):
    # batch on lanes, factors on sublanes.
    cust_t = embed_customer.T   # (F, Nc)
    art_t = embed_article.T     # (F, Na)

    # Tile selection: one full-batch step for small B; 128-aligned lane tiles
    # (default 512) with a padded batch for large B so the "parallel" grid axis
    # has multiple steps (megacore sharding on v7x).
    if B <= tb:
        tb = B
        b_pad = B
    else:
        tb = max(128, (tb // 128) * 128)
        b_pad = -(-B // tb) * tb

    def prep_idx(idx):
        idx = idx.astype(jnp.int32)
        if b_pad != B:
            idx = jnp.pad(idx, (0, b_pad - B))   # pad with row 0; sliced off below
        return idx.reshape(1, b_pad)

    cidx = prep_idx(customer)
    ai_idx = prep_idx(article_i)
    aj_idx = prep_idx(article_j)

    itemsize = jnp.dtype(dtype).itemsize
    cost = pl.CostEstimate(
        flops=2 * b_pad * F * (Nc + 2 * Na) + 4 * b_pad * F,
        transcendentals=2 * b_pad,
        bytes_accessed=(Nc + Na) * F * itemsize + 3 * b_pad * 4 + 2 * b_pad * itemsize,
    )

    tbl_c_spec = pl.BlockSpec((F, Nc), lambda i: (0, 0))   # whole table, fetched once
    tbl_a_spec = pl.BlockSpec((F, Na), lambda i: (0, 0))
    idx_spec = pl.BlockSpec((1, tb), lambda i: (0, i))
    out_spec = pl.BlockSpec((2, tb), lambda i: (0, i))     # lane-dense stacked output

    out = pl.pallas_call(
        bpr_kernel,
        out_shape=jax.ShapeDtypeStruct((2, b_pad), dtype),
        grid_spec=pltpu.PrefetchScalarGridSpec(
            num_scalar_prefetch=0,
            grid=(b_pad // tb,),
            in_specs=[tbl_c_spec, tbl_a_spec, idx_spec, idx_spec, idx_spec],
            out_specs=out_spec,
        ),
        compiler_params=pltpu.CompilerParams(
            dimension_semantics=("parallel",)),
        cost_estimate=cost,
    )(cust_t, art_t, cidx, ai_idx, aj_idx)

    return out[0, :B], out[1, :B]


if __name__ == "__main__":
    # Deterministic synthetic parameters / inputs (matches nn.Embedding init:
    # normal with std=0.01).
    customer_count, article_count, factor_num = 64, 48, 32
    B = 16

    key = jax.random.PRNGKey(0)
    k1, k2, k3, k4, k5 = jax.random.split(key, 5)

    embed_customer = 0.01 * jax.random.normal(
        k1, (customer_count, factor_num), dtype=jnp.float32)
    embed_article = 0.01 * jax.random.normal(
        k2, (article_count, factor_num), dtype=jnp.float32)

    customer = jax.random.randint(k3, (B,), 0, customer_count, dtype=jnp.int32)
    article_i = jax.random.randint(k4, (B,), 0, article_count, dtype=jnp.int32)
    article_j = jax.random.randint(k5, (B,), 0, article_count, dtype=jnp.int32)

    pred_i, pred_j = nn_model_forward(
        embed_customer, embed_article, customer, article_i, article_j)
    jax.block_until_ready((pred_i, pred_j))

    # Pure-JAX reference for correctness.
    c = embed_customer[customer]
    ai = embed_article[article_i]
    aj = embed_article[article_j]
    ref_i = jax.nn.sigmoid(jnp.sum(c * ai, axis=1))
    ref_j = jax.nn.sigmoid(jnp.sum(c * aj, axis=1))

    assert pred_i.shape == (B,) and pred_j.shape == (B,)
    assert jnp.allclose(pred_i, ref_i, atol=1e-5, rtol=1e-5)
    assert jnp.allclose(pred_j, ref_j, atol=1e-5, rtol=1e-5)

    print("KERNEL_OK")
</pallas_src>

<mosaic_0001>
module attributes {stable_mosaic.version = 11 : i64} {
  func.func @bpr_kernel(%arg0: i32, %arg1: memref<32x64xf32, #tpu.memory_space<vmem>>, %arg2: memref<32x48xf32, #tpu.memory_space<vmem>>, %arg3: memref<1x16xi32, #tpu.memory_space<vmem>>, %arg4: memref<1x16xi32, #tpu.memory_space<vmem>>, %arg5: memref<1x16xi32, #tpu.memory_space<vmem>>, %arg6: memref<2x16xf32, #tpu.memory_space<vmem>>) attributes {dimension_semantics = [#tpu.dimension_semantics<parallel>], iteration_bounds = array<i64: 1>, scalar_prefetch = 0 : i64, scratch_operands = 0 : i64, tpu.core_type = #tpu.core_type<tc>, window_params = [{pipeline_mode = #tpu.pipeline_mode<synchronous>, transform_indices = @transform_0, window_bounds = array<i64: 32, 64>}, {pipeline_mode = #tpu.pipeline_mode<synchronous>, transform_indices = @transform_1, window_bounds = array<i64: 32, 48>}, {transform_indices = @transform_2, window_bounds = array<i64: 1, 16>}, {transform_indices = @transform_3, window_bounds = array<i64: 1, 16>}, {transform_indices = @transform_4, window_bounds = array<i64: 1, 16>}, {transform_indices = @transform_5, window_bounds = array<i64: 2, 16>}]} {
    %c0 = arith.constant 0 : index
    %c0_0 = arith.constant 0 : index
    %0 = vector.load %arg1[%c0, %c0_0] : memref<32x64xf32, #tpu.memory_space<vmem>>, vector<32x64xf32>
    %c0_1 = arith.constant 0 : index
    %c0_2 = arith.constant 0 : index
    %1 = vector.load %arg2[%c0_1, %c0_2] : memref<32x48xf32, #tpu.memory_space<vmem>>, vector<32x48xf32>
    %2 = tpu.iota {dimensions = array<i32: 0>} : vector<64x16xi32>
    %3 = tpu.iota {dimensions = array<i32: 0>} : vector<48x16xi32>
    %c0_3 = arith.constant 0 : index
    %c0_4 = arith.constant 0 : index
    %4 = vector.load %arg3[%c0_3, %c0_4] : memref<1x16xi32, #tpu.memory_space<vmem>>, vector<1x16xi32>
    %5 = vector.broadcast %4 : vector<1x16xi32> to vector<64x16xi32>
    %6 = arith.cmpi eq, %2, %5 : vector<64x16xi32>
    %7 = arith.extui %6 : vector<64x16xi1> to vector<64x16xi32>
    %8 = arith.sitofp %7 : vector<64x16xi32> to vector<64x16xf32>
    %c0_5 = arith.constant 0 : index
    %c0_6 = arith.constant 0 : index
    %9 = vector.load %arg4[%c0_5, %c0_6] : memref<1x16xi32, #tpu.memory_space<vmem>>, vector<1x16xi32>
    %10 = vector.broadcast %9 : vector<1x16xi32> to vector<48x16xi32>
    %11 = arith.cmpi eq, %3, %10 : vector<48x16xi32>
    %12 = arith.extui %11 : vector<48x16xi1> to vector<48x16xi32>
    %13 = arith.sitofp %12 : vector<48x16xi32> to vector<48x16xf32>
    %c0_7 = arith.constant 0 : index
    %c0_8 = arith.constant 0 : index
    %14 = vector.load %arg5[%c0_7, %c0_8] : memref<1x16xi32, #tpu.memory_space<vmem>>, vector<1x16xi32>
    %15 = vector.broadcast %14 : vector<1x16xi32> to vector<48x16xi32>
    %16 = arith.cmpi eq, %3, %15 : vector<48x16xi32>
    %17 = arith.extui %16 : vector<48x16xi1> to vector<48x16xi32>
    %18 = arith.sitofp %17 : vector<48x16xi32> to vector<48x16xf32>
    %cst = arith.constant dense<0.000000e+00> : vector<32x16xf32>
    %19 = tpu.matmul %0, %8, %cst {dimension_numbers = #tpu.dot_dimension_numbers<[1], [0], [0], [1], [0, 0, 1, 1], [], []>, precision = #tpu.contract_precision<fp32>} : vector<32x64xf32>, vector<64x16xf32>, vector<32x16xf32> -> vector<32x16xf32>
    %cst_9 = arith.constant dense<0.000000e+00> : vector<32x16xf32>
    %20 = tpu.matmul %1, %13, %cst_9 {dimension_numbers = #tpu.dot_dimension_numbers<[1], [0], [0], [1], [0, 0, 1, 1], [], []>, precision = #tpu.contract_precision<fp32>} : vector<32x48xf32>, vector<48x16xf32>, vector<32x16xf32> -> vector<32x16xf32>
    %cst_10 = arith.constant dense<0.000000e+00> : vector<32x16xf32>
    %21 = tpu.matmul %1, %18, %cst_10 {dimension_numbers = #tpu.dot_dimension_numbers<[1], [0], [0], [1], [0, 0, 1, 1], [], []>, precision = #tpu.contract_precision<fp32>} : vector<32x48xf32>, vector<48x16xf32>, vector<32x16xf32> -> vector<32x16xf32>
    %22 = arith.mulf %19, %20 : vector<32x16xf32>
    %cst_11 = arith.constant dense<0.000000e+00> : vector<16xf32>
    %23 = vector.multi_reduction <add>, %22, %cst_11 [0] : vector<32x16xf32> to vector<16xf32>
    %24 = vector.shape_cast %23 : vector<16xf32> to vector<1x16xf32>
    %25 = arith.mulf %19, %21 : vector<32x16xf32>
    %cst_12 = arith.constant dense<0.000000e+00> : vector<16xf32>
    %26 = vector.multi_reduction <add>, %25, %cst_12 [0] : vector<32x16xf32> to vector<16xf32>
    %27 = vector.shape_cast %26 : vector<16xf32> to vector<1x16xf32>
    %28 = tpu.concatenate %24, %27 in 0 : vector<1x16xf32>, vector<1x16xf32> -> vector<2x16xf32>
    %29 = arith.negf %28 : vector<2x16xf32>
    %30 = math.exp %29 : vector<2x16xf32>
    %cst_13 = arith.constant 1.000000e+00 : f32
    %31 = vector.broadcast %cst_13 : f32 to vector<2x16xf32>
    %32 = arith.addf %31, %30 : vector<2x16xf32>
    %33 = arith.divf %31, %32 : vector<2x16xf32>
    %c0_14 = arith.constant 0 : index
    %c0_15 = arith.constant 0 : index
    %34 = vector.load %arg6[%c0_14, %c0_15] : memref<2x16xf32, #tpu.memory_space<vmem>>, vector<2x16xf32>
    tpu.vector_store %arg6[%c0_14, %c0_15], %33 {strides = array<i32>} : memref<2x16xf32, #tpu.memory_space<vmem>>, vector<2x16xf32>,
    return
  }
  func.func @transform_0(%arg0: i32) -> (i32, i32) {
    %c0_i32 = arith.constant 0 : i32
    %c0_i32_0 = arith.constant 0 : i32
    %c0_i32_1 = arith.constant 0 : i32
    return %c0_i32, %c0_i32_0 : i32, i32
  }
  func.func @transform_1(%arg0: i32) -> (i32, i32) {
    %c0_i32 = arith.constant 0 : i32
    %c0_i32_0 = arith.constant 0 : i32
    %c0_i32_1 = arith.constant 0 : i32
    return %c0_i32, %c0_i32_0 : i32, i32
  }
  func.func @transform_2(%arg0: i32) -> (i32, i32) {
    %c0_i32 = arith.constant 0 : i32
    %c0_i32_0 = arith.constant 0 : i32
    return %c0_i32, %arg0 : i32, i32
  }
  func.func @transform_3(%arg0: i32) -> (i32, i32) {
    %c0_i32 = arith.constant 0 : i32
    %c0_i32_0 = arith.constant 0 : i32
    return %c0_i32, %arg0 : i32, i32
  }
  func.func @transform_4(%arg0: i32) -> (i32, i32) {
    %c0_i32 = arith.constant 0 : i32
    %c0_i32_0 = arith.constant 0 : i32
    return %c0_i32, %arg0 : i32, i32
  }
  func.func @transform_5(%arg0: i32) -> (i32, i32) {
    %c0_i32 = arith.constant 0 : i32
    %c0_i32_0 = arith.constant 0 : i32
    return %c0_i32, %arg0 : i32, i32
  }
}

</mosaic_0001>

<bundles_post_ra>
// kernel: tpu_custom_call.1
= control target key start
LH: loop header
LB: loop body
LE: loop exit
PB: predicated region body
PF: predicated region fallthrough
CT: control target
= control target key end

     0   :  { %10 = vsyncpa [#allocation3], 0  ;;  %s2150_s0 = inlined_call_operand.hbm [shape: f32[32,64], index: 0, kind: input, shape index: {}]   ;;  %s2151_s1 = inlined_call_operand.hbm [shape: f32[32,48], index: 1, kind: input, shape index: {}]   ;;  %s2152_s2 = inlined_call_operand.vmem [shape: s32[1,16], index: 2, kind: input, shape index: {}]   ;;  %s2153_s3 = inlined_call_operand.vmem [shape: s32[1,16], index: 3, kind: input, shape index: {}]   ;;  %s2154_s4 = inlined_call_operand.vmem [shape: s32[1,16], index: 4, kind: input, shape index: {}]   ;;  %s2155_s5 = inlined_call_operand.hbm [shape: f32[2,16], index: 5, kind: output, shape index: {}]  }
   0x1   :  { %11 = vsyncpa [#allocation6], 0 }
   0x2   :  { %12 = vsyncpa [#allocation4], 0  ;;  %s17_s20 = sshll.u32 %s2150_s0, 4  ;;  %s1365_s21 = smov [#allocation2]   ;;  %s18_s20 = int_to_ptr.hbm [resolvable:$true] %s17_s20 }
   0x3   :  { %s19_s22 = sshll.u32 %s1365_s21, 4  ;;  %s30_s25 = sshll.u32 %s2151_s1, 4  ;;  %s20_s22 = int_to_ptr.vmem [resolvable:$true] %s19_s22  ;;  %s31_s25 = int_to_ptr.hbm [resolvable:$true] %s30_s25 }
   0x4   :  { %s1366_s26 = smov 128   ;;  %s1367_s27 = smov 8  }
   0x5   :  { %25 = dma.hbm_to_vmem [thread:$0]  %s18_s20, 512, %s20_s22, [#allocation3], %s1366_s26, %s1366_s26, %s1367_s27  }
   0x6   :  { %s1368_s28 = smov [#allocation5]  }
   0x7   :  { %s32_s29 = sshll.u32 %s1368_s28, 4  ;;  %s33_s29 = int_to_ptr.vmem [resolvable:$true] %s32_s29 }
   0x8   :  { %38 = dma.hbm_to_vmem [thread:$0]  %s31_s25, 512, %s33_s29, [#allocation6], %s1366_s26, %s1366_s26, %s1367_s27  }
   0x9   :  { %1359 = dma.done.wait [#allocation3], 512  }
   0xa   :  { %1360 = vsyncadd [#allocation3], 4294966784 }
   0xb   :  { %1361 = dma.done.wait [#allocation6], 512  }
   0xc   :  { %1362 = vsyncadd [#allocation6], 4294966784  ;;  %v61_v0 = vlaneseq  ;;  %vm136_vm0 = vcmask 523264   ;;  %v1280_v8 = vld [vmem:[%s2152_s2] ss:$0 sm:$0xff]  ;;  %v55_v10 = vld [vmem:[#allocation2 + $0x10] sm:$0xff] }
   0xd   :  { %v144_v11 = vsel %vm136_vm0, %v55_v10, 0  ;;  %v1369_v16 = vmov 1.0   ;;  %v1370_v18 = vmov 0.0   ;;  %v56_v46 = vld [vmem:[#allocation2 + $0x18] sm:$0xff]  ;;  %v53_v53 = vld [vmem:[#allocation2] sm:$0xff]  ;;  %v54_v61 = vld [vmem:[#allocation2 + $0x8] sm:$0xff] }
   0xe   :  { %v1408_v1 = vshrl.u32 %v61_v0, 7  ;;  %v1493_v28 = vand.u32 4294901760, %v144_v11  ;;  %v147_v56 = vsel %vm136_vm0, %v56_v46, 0  ;;  %vm479_vm15 = vcmask 392192   ;;  %v58_v27 = vld [vmem:[#allocation5 + $0x8] sm:$0xff]  ;;  %s1165_s10 = sshll.u32 %s2155_s5, 4  ;;  %s1166_s10 = int_to_ptr.hbm [resolvable:$true] %s1165_s10 }
   0xf   :  { %v1572_v60 = vand.u32 4294901760, %v147_v56 }
  0x10   :  { %v69_v2 = vadd.s32 56, %v1408_v1  ;;  %v68_v3 = vadd.s32 48, %v1408_v1  ;;  %v1413_v4 = vadd.s32 40, %v1408_v1  ;;  %v1416_v5 = vadd.s32 32, %v1408_v1 }
  0x11   :  { %v1419_v6 = vadd.s32 24, %v1408_v1  ;;  %v1422_v7 = vadd.s32 16, %v1408_v1  ;;  %v1428_v9 = vadd.s32 8, %v1408_v1  ;;  %vm1489_vm8 = vcmp.eq.s32.totalorder %v1408_v1, %v1280_v8 }
  0x12   :  { %vm1431_vm1 = vcmp.eq.s32.totalorder %v69_v2, %v1280_v8  ;;  %vm1435_vm2 = vcmp.eq.s32.totalorder %v68_v3, %v1280_v8  ;;  %vm1440_vm3 = vcmp.eq.s32.totalorder %v1413_v4, %v1280_v8  ;;  %vm1445_vm4 = vcmp.eq.s32.totalorder %v1416_v5, %v1280_v8 }
  0x13   :  { %1257 = vmatpush.msk.msra.mxu2 %vm1431_vm1, %v1369_v16  ;;  %vm1453_vm5 = vcmp.eq.s32.totalorder %v1419_v6, %v1280_v8  ;;  %v1183_v19 = vsel %vm1431_vm1, 1.0, %v1370_v18  ;;  %vm1461_vm6 = vcmp.eq.s32.totalorder %v1422_v7, %v1280_v8  ;;  %v1182_v21 = vsel %vm1435_vm2, 1.0, %v1370_v18  ;;  %1196 = vmatpush.msk.msra.mxu0 %vm1431_vm1, %v1369_v16 }
  0x14   :  { %v1471_v22 = vsub.f32 %v1183_v19, %v1183_v19  ;;  %v1473_v23 = vsub.f32 %v1182_v21, %v1182_v21  ;;  %vm1476_vm7 = vcmp.eq.s32.totalorder %v1428_v9, %v1280_v8  ;;  %v1181_v25 = vsel %vm1440_vm3, 1.0, %v1370_v18 }
  0x15   :  { %1258 = vmatpush.msk.msra.mxu2 %vm1435_vm2, %v1369_v16  ;;  %v1486_v26 = vsub.f32 %v1181_v25, %v1181_v25  ;;  %v1180_v29 = vsel %vm1445_vm4, 1.0, %v1370_v18  ;;  %1197 = vmatpush.msk.msra.mxu0 %vm1435_vm2, %v1369_v16  ;;  %v1179_v33 = vsel %vm1453_vm5, 1.0, %v1370_v18  ;;  %v1513_v35 = vsub.f32 %v144_v11, %v1493_v28 }
  0x16   :  { %v216_v30 = vand.u32 4294901760, %v1471_v22  ;;  %v222_v31 = vand.u32 4294901760, %v1473_v23  ;;  %v1503_v32 = vsub.f32 %v1180_v29, %v1180_v29  ;;  %v1515_v36 = vsub.f32 %v1179_v33, %v1179_v33 }
  0x17   :  { %1259 = vmatpush.msk.msra.mxu2 %vm1440_vm3, %v1369_v16  ;;  %v228_v34 = vand.u32 4294901760, %v1486_v26  ;;  %v1178_v37 = vsel %vm1461_vm6, 1.0, %v1370_v18  ;;  %1198 = vmatpush.msk.msra.mxu0 %vm1440_vm3, %v1369_v16  ;;  %v191_v43 = vand.u32 4294901760, %v1513_v35  ;;  %v1177_v45 = vsel %vm1476_vm7, 1.0, %v1370_v18 }
  0x18   :  { %v217_v38 = vsub.f32 %v1471_v22, %v216_v30  ;;  %v223_v39 = vsub.f32 %v1473_v23, %v222_v31  ;;  %v234_v40 = vand.u32 4294901760, %v1503_v32  ;;  %v1530_v41 = vsub.f32 %v1178_v37, %v1178_v37 }
  0x19   :  { %1260 = vmatpush.msk.msra.mxu2 %vm1445_vm4, %v1369_v16  ;;  %v229_v42 = vsub.f32 %v1486_v26, %v228_v34  ;;  %v240_v44 = vand.u32 4294901760, %v1515_v36  ;;  %1199 = vmatpush.msk.msra.mxu0 %vm1445_vm4, %v1369_v16  ;;  %v192_v51 = vsub.f32 %v1513_v35, %v191_v43  ;;  %v1556_v52 = vsub.f32 %v1177_v45, %v1177_v45 }
  0x1a   :  { %v218_v47 = vand.u32 4294901760, %v217_v38  ;;  %v224_v48 = vand.u32 4294901760, %v223_v39  ;;  %v235_v49 = vsub.f32 %v1503_v32, %v234_v40  ;;  %v246_v50 = vand.u32 4294901760, %v1530_v41  ;;  %v1617_v39 = vld [vmem:[%s2153_s3] ss:$0 sm:$0xff] }
  0x1b   :  { %1261 = vmatpush.msk.msra.mxu2 %vm1453_vm5, %v1369_v16  ;;  %1200 = vmatpush.msk.msra.mxu0 %vm1453_vm5, %v1369_v16  ;;  %v230_v54 = vand.u32 4294901760, %v229_v42  ;;  %v241_v55 = vsub.f32 %v1515_v36, %v240_v44  ;;  %v1176_v57 = vsel %vm1489_vm8, 1.0, %v1370_v18  ;;  %v252_v59 = vand.u32 4294901760, %v1556_v52 }
  0x1c   :  { %1265 = vmatpush.msra.mxu3 %v218_v47  ;;  %219 = vmatpush.msra.mxu1 %v218_v47  ;;  %v236_v58 = vand.u32 4294901760, %v235_v49  ;;  %v193_v62 = vand.u32 4294901760, %v192_v51  ;;  %v247_v63 = vsub.f32 %v1530_v41, %v246_v50  ;;  %v1580_v0 = vsub.f32 %v1176_v57, %v1176_v57 }
  0x1d   :  { %1262 = vmatpush.msk.msra.mxu2 %vm1461_vm6, %v1369_v16  ;;  %1201 = vmatpush.msk.msra.mxu0 %vm1461_vm6, %v1369_v16  ;;  %v138_v2 = vsel %vm136_vm0, %v53_v53, 0  ;;  %v1587_v3 = vsub.f32 %v147_v56, %v1572_v60  ;;  %v242_v10 = vand.u32 4294901760, %v241_v55  ;;  %v253_v11 = vsub.f32 %v1556_v52, %v252_v59 }
  0x1e   :  { %1266 = vmatpush.msra.mxu3 %v224_v48  ;;  %225 = vmatpush.msra.mxu1 %v224_v48  ;;  %v1592_v8 = vand.u32 4294901760, %v138_v2  ;;  %v258_v19 = vand.u32 4294901760, %v1580_v0  ;;  %v141_v21 = vsel %vm136_vm0, %v54_v61, 0  ;;  %v248_v37 = vand.u32 4294901760, %v247_v63 }
  0x1f   :  { %1263 = vmatpush.msk.msra.mxu2 %vm1476_vm7, %v1369_v16  ;;  %1202 = vmatpush.msk.msra.mxu0 %vm1476_vm7, %v1369_v16  ;;  %v199_v25 = vand.u32 4294901760, %v1587_v3  ;;  %v1609_v33 = vand.u32 4294901760, %v141_v21  ;;  %v254_v46 = vand.u32 4294901760, %v253_v11  ;;  %vm103_vm9 = vcmp.eq.s32.totalorder %v1413_v4, %v1617_v39 }
  0x20   :  { %1267 = vmatpush.msra.mxu3 %v230_v54  ;;  %231 = vmatpush.msra.mxu1 %v230_v54  ;;  %v1607_v29 = vsub.f32 %v138_v2, %v1592_v8  ;;  %v259_v38 = vsub.f32 %v1580_v0, %v258_v19  ;;  %vm102_vm10 = vcmp.eq.s32.totalorder %v1416_v5, %v1617_v39 }
  0x21   :  { %1264 = vmatpush.msk.msra.mxu2 %vm1489_vm8, %v1369_v16  ;;  %1203 = vmatpush.msk.msra.mxu0 %vm1489_vm8, %v1369_v16  ;;  %v200_v42 = vsub.f32 %v1587_v3, %v199_v25  ;;  %v1631_v48 = vsub.f32 %v141_v21, %v1609_v33  ;;  %vm101_vm11 = vcmp.eq.s32.totalorder %v1419_v6, %v1617_v39 }
  0x22   :  { %194 = vmatmul.f32.vlgmr.msra.gmra.mxu2 %v193_v62  ;;  %1268 = vmatpush.msra.mxu3 %v236_v58  ;;  %v175_v45 = vand.u32 4294901760, %v1607_v29  ;;  %v260_v51 = vand.u32 4294901760, %v259_v38  ;;  %v1187_v54 = vsel %vm101_vm11, 1.0, %v1370_v18  ;;  %vm100_vm12 = vcmp.eq.s32.totalorder %v1422_v7, %v1617_v39 }
  0x23   :  { %289 = vmatpush.msrb.mxu2 %v1471_v22  ;;  %237 = vmatpush.msra.mxu1 %v236_v58  ;;  %v201_v49 = vand.u32 4294901760, %v200_v42  ;;  %vm99_vm13 = vcmp.eq.s32.totalorder %v1428_v9, %v1617_v39  ;;  %v1693_v56 = vsub.f32 %v1187_v54, %v1187_v54  ;;  %vm98_vm14 = vcmp.eq.s32.totalorder %v1408_v1, %v1617_v39 }
  0x24   :  { %1269 = vmatpush.msra.mxu3 %v242_v10  ;;  %392 = vmatpush.msrb.mxu0 %v216_v30  ;;  %v176_v47 = vsub.f32 %v1607_v29, %v175_v45  ;;  %v183_v30 = vand.u32 4294901760, %v1631_v48  ;;  %v1185_v13 = vsel %vm99_vm13, 1.0, %v1370_v18  ;;  %v1184_v15 = vsel %vm98_vm14, 1.0, %v1370_v18 }
  0x25   :  { %292 = vmatpush.msrb.mxu2 %v1473_v23  ;;  %243 = vmatpush.msra.mxu1 %v242_v10  ;;  %v1189_v23 = vsel %vm103_vm9, 1.0, %v1370_v18  ;;  %v571_v58 = vand.u32 4294901760, %v1693_v56  ;;  %v1737_v62 = vsub.f32 %v1185_v13, %v1185_v13  ;;  %v57_v10 = vld [vmem:[#allocation5] sm:$0xff]  ;;  %v60_v13 = vld [vmem:[#allocation5 + $0x18] sm:$0xff] }
  0x26   :  { %1270 = vmatpush.msra.mxu3 %v248_v37  ;;  %396 = vmatpush.msrb.mxu0 %v222_v31  ;;  %v177_v22 = vand.u32 4294901760, %v176_v47  ;;  %v1659_v31 = vsub.f32 %v1189_v23, %v1189_v23  ;;  %v481_v20 = vsel %vm479_vm15, %v57_v10, 0 }
  0x27   :  { %295 = vmatpush.msrb.mxu2 %v1486_v26  ;;  %249 = vmatpush.msra.mxu1 %v248_v37  ;;  %v1188_v26 = vsel %vm102_vm10, 1.0, %v1370_v18  ;;  %v572_v17 = vsub.f32 %v1693_v56, %v571_v58  ;;  %v1795_v11 = vand.u32 4294901760, %v481_v20  ;;  %v1826_v37 = vld [vmem:[%s2154_s4] ss:$0 sm:$0xff]  ;;  %s1371_s4 = smov [#allocation7]  }
  0x28   :  { %1271 = vmatpush.msra.mxu3 %v254_v46  ;;  %400 = vmatpush.msrb.mxu0 %v228_v34  ;;  %v184_v34 = vsub.f32 %v1631_v48, %v183_v30  ;;  %v1669_v53 = vsub.f32 %v1188_v26, %v1188_v26  ;;  %v559_v55 = vand.u32 4294901760, %v1659_v31  ;;  %vm123_vm0 = vcmp.eq.s32.totalorder %v1413_v4, %v1826_v37  ;;  %s1163_s7 = sshll.u32 %s1371_s4, 4  ;;  %s1164_s7 = int_to_ptr.vmem [resolvable:$true] %s1163_s7 }
  0x29   :  { %298 = vmatpush.msrb.mxu2 %v1503_v32  ;;  %255 = vmatpush.msra.mxu1 %v254_v46  ;;  %v1186_v32 = vsel %vm100_vm12, 1.0, %v1370_v18  ;;  %v1814_v21 = vsub.f32 %v481_v20, %v1795_v11  ;;  %v1195_v46 = vsel %vm123_vm0, 1.0, %v1370_v18 }
  0x2a   :  { %202 = vmatmul.f32.gmra.mxu2 %v201_v49  ;;  %1272 = vmatpush.msra.mxu3 %v260_v51  ;;  %v185_v12 = vand.u32 4294901760, %v184_v34  ;;  %v560_v14 = vsub.f32 %v1659_v31, %v559_v55  ;;  %v1724_v57 = vsub.f32 %v1186_v32, %v1186_v32 }
  0x2b   :  { %271 = vmatmul.f32.vlgmr.msra.gmra.mxu3 %v1493_v28  ;;  %301 = vmatpush.msrb.mxu2 %v1515_v36  ;;  %v1764_v36 = vsub.f32 %v1184_v15, %v1184_v15  ;;  %v1842_v42 = vand.u32 4294901760, %v1814_v21 }
  0x2c   :  { %1204 = vmatpush.msk.msrb.mxu3 %vm1431_vm1, %v1369_v16  ;;  %261 = vmatpush.msra.mxu1 %v260_v51  ;;  %v561_v63 = vand.u32 4294901760, %v560_v14  ;;  %v577_v2 = vand.u32 4294901760, %v1724_v57  ;;  %v59_v51 = vld [vmem:[#allocation5 + $0x10] sm:$0xff] }
  0x2d   :  { %304 = vmatpush.msrb.mxu2 %v1530_v41  ;;  %178 = vmatmul.f32.vlgmr.msra.gmra.mxu0 %v177_v22  ;;  %v583_v41 = vand.u32 4294901760, %v1737_v62  ;;  %v517_v22 = vsub.f32 %v1814_v21, %v1842_v42 }
  0x2e   :  { %1205 = vmatpush.msk.msrb.mxu3 %vm1435_vm2, %v1369_v16  ;;  %263 = vmatmul.f32.vlgmr.msra.gmra.mxu1 %v1592_v8 }
  0x2f   :  { %307 = vmatpush.msrb.mxu2 %v1556_v52  ;;  %1212 = vmatpush.msk.msrb.mxu1 %vm1431_vm1, %v1369_v16  ;;  %v573_v52 = vand.u32 4294901760, %v572_v17  ;;  %v584_v24 = vsub.f32 %v1737_v62, %v583_v41  ;;  %vm122_vm1 = vcmp.eq.s32.totalorder %v1416_v5, %v1826_v37 }
  0x30   :  { %1206 = vmatpush.msk.msrb.mxu3 %vm1440_vm3, %v1369_v16  ;;  %404 = vmatpush.msrb.mxu0 %v234_v40  ;;  %v565_v40 = vand.u32 4294901760, %v1669_v53  ;;  %v1194_v47 = vsel %vm122_vm1, 1.0, %v1370_v18 }
  0x31   :  { %310 = vmatpush.msrb.mxu2 %v1580_v0  ;;  %1213 = vmatpush.msk.msrb.mxu1 %vm1435_vm2, %v1369_v16  ;;  %v1859_v49 = vsub.f32 %v1194_v47, %v1194_v47  ;;  %vm121_vm2 = vcmp.eq.s32.totalorder %v1419_v6, %v1826_v37 }
  0x32   :  { %1207 = vmatpush.msk.msrb.mxu3 %vm1445_vm4, %v1369_v16  ;;  %313 = vmatmul.f32.vlgmr.msrb.gmra.mxu2 %v1607_v29  ;;  %v566_v61 = vsub.f32 %v1669_v53, %v565_v40  ;;  %v484_v29 = vsel %vm479_vm15, %v58_v27, 0 }
  0x33   :  { %275 = vmatmul.f32.gmra.mxu3 %v1572_v60  ;;  %1214 = vmatpush.msk.msrb.mxu1 %vm1440_vm3, %v1369_v16  ;;  %v869_v34 = vand.u32 4294901760, %v1859_v49  ;;  %vm120_vm3 = vcmp.eq.s32.totalorder %v1422_v7, %v1826_v37 }
  0x34   :  { %1208 = vmatpush.msk.msrb.mxu3 %vm1453_vm5, %v1369_v16  ;;  %1220 = vmatpush.msk.msra.mxu2 %vm103_vm9, %v1369_v16 }
  0x35   :  { %1215 = vmatpush.msk.msrb.mxu1 %vm1445_vm4, %v1369_v16  ;;  %186 = vmatmul.f32.gmra.mxu0 %v185_v12  ;;  %vm119_vm4 = vcmp.eq.s32.totalorder %v1428_v9, %v1826_v37 }
  0x36   :  { %1209 = vmatpush.msk.msrb.mxu3 %vm1461_vm6, %v1369_v16  ;;  %267 = vmatmul.f32.gmra.mxu1 %v1609_v33 }
  0x37   :  { %408 = vmatpush.msrb.mxu0 %v240_v44  ;;  %1216 = vmatpush.msk.msrb.mxu1 %vm1453_vm5, %v1369_v16  ;;  %v567_v44 = vand.u32 4294901760, %v566_v61  ;;  %vm118_vm5 = vcmp.eq.s32.totalorder %v1408_v1, %v1826_v37 }
  0x38   :  { %1210 = vmatpush.msk.msrb.mxu3 %vm1476_vm7, %v1369_v16  ;;  %1221 = vmatpush.msk.msra.mxu2 %vm102_vm10, %v1369_v16 }
  0x39   :  { %412 = vmatpush.msrb.mxu0 %v246_v50  ;;  %1217 = vmatpush.msk.msrb.mxu1 %vm1461_vm6, %v1369_v16  ;;  %v578_v50 = vsub.f32 %v1724_v57, %v577_v2  ;;  %vm1104_vm6 = vcmask 130048  }
  0x3a   :  { %1211 = vmatpush.msk.msrb.mxu3 %vm1489_vm8, %v1369_v16  ;;  %318 = vmatmul.f32.gmra.mxu2 %v1631_v48  ;;  %v1857_v48 = vsub.f32 %v1195_v46, %v1195_v46 }
  0x3b   :  { %359 = vmatmul.f32.vlgmr.msrb.gmra.mxu3 %v175_v45  ;;  %416 = vmatpush.msrb.mxu0 %v252_v59  ;;  %v589_v59 = vand.u32 4294901760, %v1764_v36  ;;  %v579_v0 = vand.u32 4294901760, %v578_v50  ;;  %v1845_v45 = vand.u32 4294901760, %v484_v29 }
  0x3c   :  { %562 = vmatpush.msra.mxu3 %v561_v63  ;;  %1218 = vmatpush.msk.msrb.mxu1 %vm1476_vm7, %v1369_v16  ;;  %vm1135_vm7 = vcmask 1040384  }
  0x3d   :  { %420 = vmatpush.msrb.mxu0 %v258_v19  ;;  %1222 = vmatpush.msk.msra.mxu2 %vm101_vm11, %v1369_v16  ;;  %v590_v19 = vsub.f32 %v1764_v36, %v589_v59  ;;  %v1875_v23 = vsub.f32 %v484_v29, %v1845_v45 }
  0x3e   :  { %568 = vmatpush.msra.mxu3 %v567_v44  ;;  %1219 = vmatpush.msk.msrb.mxu1 %vm1489_vm8, %v1369_v16 }
  0x3f   :  { %422 = vmatmul.f32.vlgmr.msrb.gmra.mxu0 %v1592_v8  ;;  %463 = vmatmul.f32.vlgmr.msrb.gmra.mxu1 %v1592_v8  ;;  %v585_v8 = vand.u32 4294901760, %v584_v24  ;;  %v591_v38 = vand.u32 4294901760, %v590_v19  ;;  %v1915_v12 = vand.u32 4294901760, %v1875_v23 }
  0x40   :  { %622 = vmatpush.msra.mxu0 %v1659_v31  ;;  %1226 = vmatpush.msk.msra.mxu1 %vm103_vm9, %v1369_v16  ;;  %v870_v31 = vsub.f32 %v1859_v49, %v869_v34 }
  0x41   :  { %574 = vmatpush.msra.mxu3 %v573_v52  ;;  %1223 = vmatpush.msk.msra.mxu2 %vm100_vm12, %v1369_v16 }
  0x42   :  { %323 = vmatmul.f32.gmra.mxu2 %v1513_v35  ;;  %625 = vmatpush.msra.mxu0 %v1669_v53  ;;  %v1193_v35 = vsel %vm121_vm2, 1.0, %v1370_v18  ;;  %v871_v32 = vand.u32 4294901760, %v870_v31 }
  0x43   :  { %365 = vmatmul.f32.gmra.mxu3 %v183_v30  ;;  %1227 = vmatpush.msk.msra.mxu1 %vm102_vm10, %v1369_v16  ;;  %v487_v30 = vsel %vm479_vm15, %v59_v51, 0  ;;  %v1910_v54 = vsub.f32 %v1193_v35, %v1193_v35 }
  0x44   :  { %580 = vmatpush.msra.mxu3 %v579_v0  ;;  %628 = vmatpush.msra.mxu0 %v1693_v56  ;;  %v1921_v53 = vand.u32 4294901760, %v487_v30  ;;  %v525_v56 = vsub.f32 %v1875_v23, %v1915_v12 }
  0x45   :  { %1224 = vmatpush.msk.msra.mxu2 %vm99_vm13, %v1369_v16  ;;  %1228 = vmatpush.msk.msra.mxu1 %vm101_vm11, %v1369_v16 }
  0x46   :  { %586 = vmatpush.msra.mxu3 %v585_v8  ;;  %631 = vmatpush.msra.mxu0 %v1724_v57  ;;  %v1947_v14 = vsub.f32 %v487_v30, %v1921_v53  ;;  %v1976_v15 = vand.u32 4294901760, %v525_v56 }
  0x47   :  { %426 = vmatmul.f32.gmra.mxu0 %v1609_v33  ;;  %467 = vmatmul.f32.gmra.mxu1 %v1609_v33  ;;  %v863_v33 = vand.u32 4294901760, %v1857_v48 }
  0x48   :  { %1225 = vmatpush.msk.msra.mxu2 %vm98_vm14, %v1369_v16  ;;  %1229 = vmatpush.msk.msra.mxu1 %vm100_vm12, %v1369_v16  ;;  %v1979_v63 = vand.u32 4294901760, %v1947_v14 }
  0x49   :  { %592 = vmatpush.msra.mxu3 %v591_v38  ;;  %634 = vmatpush.msra.mxu0 %v1737_v62  ;;  %v864_v26 = vsub.f32 %v1857_v48, %v863_v33 }
  0x4a   :  { %328 = vmatmul.f32.gmra.mxu2 %v1587_v3  ;;  %1230 = vmatpush.msk.msra.mxu1 %vm99_vm13, %v1369_v16  ;;  %v1192_v3 = vsel %vm120_vm3, 1.0, %v1370_v18  ;;  %v533_v39 = vsub.f32 %v1947_v14, %v1979_v63 }
  0x4b   :  { %371 = vmatmul.f32.gmra.mxu3 %v191_v43  ;;  %719 = vmatpush.msrb.mxu2 %v559_v55  ;;  %v865_v43 = vand.u32 4294901760, %v864_v26  ;;  %v1912_v55 = vand.u32 4294901760, %v517_v22  ;;  %v880_v57 = vsub.f32 %v1192_v3, %v1192_v3 }
  0x4c   :  { %1232 = vmatpush.msk.msrb.mxu3 %vm103_vm9, %v1369_v16  ;;  %637 = vmatpush.msra.mxu0 %v1764_v36  ;;  %v534_v52 = vand.u32 4294901760, %v533_v39 }
  0x4d   :  { %723 = vmatpush.msrb.mxu2 %v565_v40  ;;  %1231 = vmatpush.msk.msra.mxu1 %vm98_vm14, %v1369_v16  ;;  %v875_v40 = vand.u32 4294901760, %v1910_v54  ;;  %v881_v10 = vand.u32 4294901760, %v880_v57 }
  0x4e   :  { %1233 = vmatpush.msk.msrb.mxu3 %vm102_vm10, %v1369_v16  ;;  %1238 = vmatpush.msk.msrb.mxu0 %vm123_vm0, %v1369_v16 }
  0x4f   :  { %430 = vmatmul.f32.gmra.mxu0 %v1493_v28  ;;  %471 = vmatmul.f32.gmra.mxu1 %v1493_v28  ;;  %v876_v28 = vsub.f32 %v1910_v54, %v875_v40  ;;  %v882_v17 = vsub.f32 %v880_v57, %v881_v10 }
  0x50   :  { %727 = vmatpush.msrb.mxu2 %v571_v58  ;;  %866 = vmatpush.msrb.mxu1 %v865_v43  ;;  %v490_v58 = vsel %vm479_vm15, %v60_v13, 0 }
  0x51   :  { %1234 = vmatpush.msk.msrb.mxu3 %vm101_vm11, %v1369_v16  ;;  %1239 = vmatpush.msk.msrb.mxu0 %vm122_vm1, %v1369_v16  ;;  %v877_v61 = vand.u32 4294901760, %v876_v28  ;;  %v883_v20 = vand.u32 4294901760, %v882_v17  ;;  %vm1156_vm11 = vcmask 123904  }
  0x52   :  { %519 = vmatmul.f32.vlgmr.msra.gmra.mxu2 %v1912_v55  ;;  %872 = vmatpush.msrb.mxu1 %v871_v32 }
  0x53   :  { %377 = vmatmul.f32.gmra.mxu3 %v199_v25  ;;  %731 = vmatpush.msrb.mxu2 %v577_v2  ;;  %v1191_v25 = vsel %vm119_vm4, 1.0, %v1370_v18  ;;  %v1981_v2 = vand.u32 4294901760, %v490_v58 }
  0x54   :  { %1235 = vmatpush.msk.msrb.mxu3 %vm100_vm12, %v1369_v16  ;;  %1240 = vmatpush.msk.msrb.mxu0 %vm121_vm2, %v1369_v16  ;;  %v886_v62 = vsub.f32 %v1191_v25, %v1191_v25 }
  0x55   :  { %735 = vmatpush.msrb.mxu2 %v583_v41  ;;  %878 = vmatpush.msrb.mxu1 %v877_v61  ;;  %v2014_v36 = vsub.f32 %v490_v58, %v1981_v2 }
  0x56   :  { %1236 = vmatpush.msk.msrb.mxu3 %vm99_vm13, %v1369_v16  ;;  %1241 = vmatpush.msk.msrb.mxu0 %vm120_vm3, %v1369_v16  ;;  %v887_v44 = vand.u32 4294901760, %v886_v62 }
  0x57   :  { %434 = vmatmul.f32.gmra.mxu0 %v1572_v60  ;;  %475 = vmatmul.f32.gmra.mxu1 %v1572_v60  ;;  %v1190_v60 = vsel %vm118_vm5, 1.0, %v1370_v18 }
  0x58   :  { %739 = vmatpush.msrb.mxu2 %v589_v59  ;;  %1237 = vmatpush.msk.msrb.mxu3 %vm98_vm14, %v1369_v16  ;;  %v892_v41 = vsub.f32 %v1190_v60, %v1190_v60  ;;  %v888_v50 = vsub.f32 %v886_v62, %v887_v44  ;;  %v2027_v59 = vand.u32 4294901760, %v2014_v36 }
  0x59   :  { %1242 = vmatpush.msk.msrb.mxu0 %vm119_vm4, %v1369_v16  ;;  %884 = vmatpush.msrb.mxu1 %v883_v20 }
  0x5a   :  { %926 = vmatpush.msra.mxu2 %v1857_v48  ;;  %v893_v18 = vand.u32 4294901760, %v892_v41  ;;  %v889_v24 = vand.u32 4294901760, %v888_v50  ;;  %v541_v19 = vsub.f32 %v2014_v36, %v2027_v59 }
  0x5b   :  { %527 = vmatmul.f32.gmra.mxu2 %v1976_v15  ;;  %594 = vmatmul.f32.vlgmr.msra.gmra.mxu3 %v1795_v11 }
  0x5c   :  { %1243 = vmatpush.msk.msrb.mxu0 %vm118_vm5, %v1369_v16  ;;  %1244 = vmatpush.msk.msra.mxu3 %vm123_vm0, %v1369_v16  ;;  %v894_v0 = vsub.f32 %v892_v41, %v893_v18  ;;  %v542_v8 = vand.u32 4294901760, %v541_v19 }
  0x5d   :  { %929 = vmatpush.msra.mxu2 %v1859_v49  ;;  %890 = vmatpush.msrb.mxu1 %v889_v24 }
  0x5e   :  { %1245 = vmatpush.msk.msra.mxu3 %vm122_vm1, %v1369_v16  ;;  %v895_v27 = vand.u32 4294901760, %v894_v0 }
  0x5f   :  { %932 = vmatpush.msra.mxu2 %v1910_v54  ;;  %640 = vmatmul.f32.vlgmr.msra.gmra.mxu0 %v1814_v21 }
  0x60   :  { %684 = vmatmul.f32.vlgmr.msra.gmra.mxu1 %v1842_v42  ;;  %1023 = vmatpush.msra.mxu0 %v863_v33 }
  0x61   :  { %1246 = vmatpush.msk.msra.mxu3 %vm121_vm2, %v1369_v16  ;;  %935 = vmatpush.msra.mxu2 %v880_v57 }
  0x62   :  { %896 = vmatpush.msrb.mxu1 %v895_v27  ;;  %1027 = vmatpush.msra.mxu0 %v869_v34 }
  0x63   :  { %535 = vmatmul.f32.gmra.mxu2 %v534_v52  ;;  %598 = vmatmul.f32.gmra.mxu3 %v1845_v45 }
  0x64   :  { %1250 = vmatpush.msk.msra.mxu1 %vm123_vm0, %v1369_v16  ;;  %1247 = vmatpush.msk.msra.mxu3 %vm120_vm3, %v1369_v16 }
  0x65   :  { %938 = vmatpush.msra.mxu2 %v886_v62  ;;  %1031 = vmatpush.msra.mxu0 %v875_v40 }
  0x66   :  { %1251 = vmatpush.msk.msra.mxu1 %vm122_vm1, %v1369_v16  ;;  %1248 = vmatpush.msk.msra.mxu3 %vm119_vm4, %v1369_v16 }
  0x67   :  { %645 = vmatmul.f32.gmra.mxu0 %v1875_v23  ;;  %941 = vmatpush.msra.mxu2 %v892_v41 }
  0x68   :  { %690 = vmatmul.f32.gmra.mxu1 %v1915_v12  ;;  %1035 = vmatpush.msra.mxu0 %v881_v10 }
  0x69   :  { %1252 = vmatpush.msk.msra.mxu1 %vm121_vm2, %v1369_v16  ;;  %1249 = vmatpush.msk.msra.mxu3 %vm118_vm5, %v1369_v16 }
  0x6a   :  { %1039 = vmatpush.msra.mxu0 %v887_v44 }
  0x6b   :  { %543 = vmatmul.f32.gmra.mxu2 %v542_v8  ;;  %1253 = vmatpush.msk.msra.mxu1 %vm120_vm3, %v1369_v16 }
  0x6c   :  { %602 = vmatmul.f32.gmra.mxu3 %v1921_v53  ;;  %1043 = vmatpush.msra.mxu0 %v893_v18 }
  0x6d   :  { %1254 = vmatpush.msk.msra.mxu1 %vm119_vm4, %v1369_v16 }
  0x6f   :  { %1255 = vmatpush.msk.msra.mxu1 %vm118_vm5, %v1369_v16  ;;  %650 = vmatmul.f32.gmra.mxu0 %v1947_v14 }
  0x70   :  { %696 = vmatmul.f32.gmra.mxu1 %v1979_v63 }
  0x73   :  { %741 = vmatmul.f32.vlgmr.msrb.gmra.mxu2 %v1795_v11 }
  0x74   :  { %606 = vmatmul.f32.gmra.mxu3 %v1981_v2 }
  0x77   :  { %655 = vmatmul.f32.gmra.mxu0 %v2014_v36 }
  0x78   :  { %702 = vmatmul.f32.gmra.mxu1 %v2027_v59 }
  0x7b   :  { %745 = vmatmul.f32.gmra.mxu2 %v1845_v45 }
  0x7c   :  { %780 = vmatmul.f32.vlgmr.msrb.gmra.mxu3 %v1795_v11 }
  0x7f   :  { %823 = vmatmul.f32.vlgmr.msrb.gmra.mxu0 %v1912_v55 }
  0x80   :  { %898 = vmatmul.f32.vlgmr.msrb.gmra.mxu1 %v1795_v11 }
  0x83   :  { %749 = vmatmul.f32.gmra.mxu2 %v1921_v53 }
  0x84   :  { %784 = vmatmul.f32.gmra.mxu3 %v1845_v45 }
  0x87   :  { %831 = vmatmul.f32.gmra.mxu0 %v1976_v15 }
  0x88   :  { %902 = vmatmul.f32.gmra.mxu1 %v1845_v45 }
  0x8b   :  { %753 = vmatmul.f32.gmra.mxu2 %v1981_v2 }
  0x8c   :  { %788 = vmatmul.f32.gmra.mxu3 %v1921_v53 }
  0x8f   :  { %839 = vmatmul.f32.gmra.mxu0 %v534_v52 }
  0x90   :  { %906 = vmatmul.f32.gmra.mxu1 %v1921_v53 }
  0x93   :  { %944 = vmatmul.f32.vlgmr.msra.gmra.mxu2 %v1814_v21 }
  0x94   :  { %792 = vmatmul.f32.gmra.mxu3 %v1981_v2 }
  0x97   :  { %847 = vmatmul.f32.gmra.mxu0 %v542_v8 }
  0x98   :  { %910 = vmatmul.f32.gmra.mxu1 %v1981_v2 }
  0x9b   :  { %949 = vmatmul.f32.gmra.mxu2 %v1875_v23 }
  0x9c   :  { %988 = vmatmul.f32.vlgmr.msra.gmra.mxu3 %v1842_v42 }
  0x9f   :  { %1045 = vmatmul.f32.vlgmr.msra.gmra.mxu0 %v1795_v11 }
  0xa0   :  { %1084 = vmatmul.f32.vlgmr.msra.gmra.mxu1 %v1795_v11 }
  0xa3   :  { %954 = vmatmul.f32.gmra.mxu2 %v1947_v14 }
  0xa4   :  { %994 = vmatmul.f32.gmra.mxu3 %v1915_v12 }
  0xa5   :  { %v195_v1 = vpop.f32.mrf.mxu2 }
  0xa7   :  { %1049 = vmatmul.f32.gmra.mxu0 %v1845_v45 }
  0xa8   :  { %1088 = vmatmul.f32.gmra.mxu1 %v1845_v45 }
  0xaa   :  { %v179_v4 = vpop.f32.mrf.mxu0 }
  0xab   :  { %959 = vmatmul.f32.gmra.mxu2 %v2014_v36  ;;  %v264_v5 = vpop.f32.mrf.mxu1 }
  0xac   :  { %1000 = vmatmul.f32.gmra.mxu3 %v1979_v63  ;;  %v265_v6 = vadd.f32 %v264_v5, %v179_v4 }
  0xad   :  { %v203_v7 = vpop.f32.mrf.mxu2 }
  0xae   :  { %v272_v9 = vpop.f32.mrf.mxu3 }
  0xaf   :  { %v273_v16 = vadd.f32 %v272_v9, %v195_v1  ;;  %1053 = vmatmul.f32.gmra.mxu0 %v1921_v53 }
  0xb0   :  { %1092 = vmatmul.f32.gmra.mxu1 %v1921_v53 }
  0xb2   :  { %v187_v11 = vpop.f32.mrf.mxu0 }
  0xb3   :  { %v268_v21 = vpop.f32.mrf.mxu1 }
  0xb4   :  { %1006 = vmatmul.f32.gmra.mxu3 %v2027_v59  ;;  %v269_v29 = vadd.f32 %v268_v21, %v187_v11 }
  0xb5   :  { %v314_v37 = vpop.f32.mrf.mxu2 }
  0xb6   :  { %v315_v38 = vadd.f32 %v314_v37, %v265_v6  ;;  %v276_v42 = vpop.f32.mrf.mxu3 }
  0xb7   :  { %v277_v45 = vadd.f32 %v276_v42, %v203_v7  ;;  %1057 = vmatmul.f32.gmra.mxu0 %v1981_v2 }
  0xb8   :  { %1096 = vmatmul.f32.gmra.mxu1 %v1981_v2 }
  0xbc   :  { %v423_v46 = vpop.f32.mrf.mxu0  ;;  %v464_v47 = vpop.f32.mrf.mxu1 }
  0xbd   :  { %v319_v48 = vpop.f32.mrf.mxu2 }
  0xbe   :  { %v320_v49 = vadd.f32 %v319_v48, %v269_v29  ;;  %v360_v51 = vpop.f32.mrf.mxu3 }
  0xbf   :  { %v361_v33 = vadd.f32 %v360_v51, %v315_v38 }
  0xc1   :  { %v424_v22 = vadd.f32 %v423_v46, %v361_v33 }
  0xc3   :  { %v2123_v23 = vadd.f32 %v464_v47, %v424_v22 }
  0xc4   :  { %v427_v30 = vpop.f32.mrf.mxu0  ;;  %v468_v26 = vpop.f32.mrf.mxu1 }
  0xc5   :  { %v324_v34 = vpop.f32.mrf.mxu2 }
  0xc6   :  { %v325_v35 = vadd.f32 %v324_v34, %v273_v16  ;;  %v366_v43 = vpop.f32.mrf.mxu3 }
  0xc7   :  { %v367_v31 = vadd.f32 %v366_v43, %v320_v49 }
  0xc9   :  { %v428_v54 = vadd.f32 %v427_v30, %v367_v31 }
  0xcb   :  { %v2125_v55 = vadd.f32 %v468_v26, %v428_v54 }
  0xcc   :  { %v431_v12 = vpop.f32.mrf.mxu0  ;;  %v472_v53 = vpop.f32.mrf.mxu1 }
  0xcd   :  { %v329_v32 = vpop.f32.mrf.mxu2 }
  0xce   :  { %v330_v40 = vadd.f32 %v329_v32, %v277_v45  ;;  %v372_v13 = vpop.f32.mrf.mxu3 }
  0xcf   :  { %v373_v28 = vadd.f32 %v372_v13, %v325_v35 }
  0xd1   :  { %v432_v56 = vadd.f32 %v431_v12, %v373_v28 }
  0xd3   :  { %v2127_v14 = vadd.f32 %v472_v53, %v432_v56 }
  0xd4   :  { %v435_v58 = vpop.f32.mrf.mxu0  ;;  %v476_v61 = vpop.f32.mrf.mxu1 }
  0xd5   :  { %v520_v3 = vpop.f32.mrf.mxu2 }
  0xd6   :  { %v378_v25 = vpop.f32.mrf.mxu3 }
  0xd7   :  { %v379_v57 = vadd.f32 %v378_v25, %v330_v40 }
  0xd9   :  { %v436_v15 = vadd.f32 %v435_v58, %v379_v57 }
  0xdb   :  { %v2129_v63 = vadd.f32 %v476_v61, %v436_v15 }
  0xdc   :  { %v641_v2 = vpop.f32.mrf.mxu0 }
  0xdd   :  { %v685_v62 = vpop.f32.mrf.mxu1 }
  0xde   :  { %v528_v10 = vpop.f32.mrf.mxu2  ;;  %v595_v17 = vpop.f32.mrf.mxu3 }
  0xdf   :  { %v596_v60 = vadd.f32 %v595_v17, %v520_v3 }
  0xe1   :  { %v642_v39 = vadd.f32 %v641_v2, %v596_v60 }
  0xe3   :  { %v686_v36 = vadd.f32 %v685_v62, %v642_v39 }
  0xe4   :  { %v646_v44 = vpop.f32.mrf.mxu0 }
  0xe5   :  { %v691_v41 = vpop.f32.mrf.mxu1 }
  0xe6   :  { %v536_v20 = vpop.f32.mrf.mxu2  ;;  %v599_v50 = vpop.f32.mrf.mxu3 }
  0xe7   :  { %v600_v18 = vadd.f32 %v599_v50, %v528_v10 }
  0xe9   :  { %v647_v52 = vadd.f32 %v646_v44, %v600_v18 }
  0xeb   :  { %v692_v59 = vadd.f32 %v691_v41, %v647_v52 }
  0xec   :  { %v651_v24 = vpop.f32.mrf.mxu0 }
  0xed   :  { %v697_v0 = vpop.f32.mrf.mxu1 }
  0xee   :  { %v544_v27 = vpop.f32.mrf.mxu2 }
  0xef   :  { %v603_v19 = vpop.f32.mrf.mxu3 }
  0xf0   :  { %v604_v8 = vadd.f32 %v603_v19, %v536_v20 }
  0xf2   :  { %v652_v1 = vadd.f32 %v651_v24, %v604_v8 }
  0xf4   :  { %v698_v4 = vadd.f32 %v697_v0, %v652_v1  ;;  %v656_v5 = vpop.f32.mrf.mxu0 }
  0xf5   :  { %v703_v6 = vpop.f32.mrf.mxu1 }
  0xf6   :  { %v742_v7 = vpop.f32.mrf.mxu2 }
  0xf7   :  { %v607_v9 = vpop.f32.mrf.mxu3  ;;  %v743_v21 = vadd.f32 %v742_v7, %v686_v36 }
  0xf8   :  { %v608_v22 = vadd.f32 %v607_v9, %v544_v27 }
  0xfa   :  { %v657_v53 = vadd.f32 %v656_v5, %v608_v22 }
  0xfc   :  { %v824_v16 = vpop.f32.mrf.mxu0  ;;  %v704_v13 = vadd.f32 %v703_v6, %v657_v53 }
  0xfd   :  { %v899_v11 = vpop.f32.mrf.mxu1 }
  0xfe   :  { %v746_v29 = vpop.f32.mrf.mxu2  ;;  %v900_v62 = vadd.f32 %v899_v11, %v824_v16 }
  0xff   :  { %v781_v37 = vpop.f32.mrf.mxu3  ;;  %v747_v47 = vadd.f32 %v746_v29, %v692_v59 }
 0x100   :  { %v782_v38 = vadd.f32 %v781_v37, %v743_v21 }
 0x102   :  { %v1100_v42 = vmul.f32 %v782_v38, %v2123_v23 }
 0x104   :  { %v832_v45 = vpop.f32.mrf.mxu0  ;;  %v1105_v30 = vsel %vm1104_vm6, %v1100_v42, 0.0 }
 0x105   :  { %v903_v46 = vpop.f32.mrf.mxu1 }
 0x106   :  { %v750_v48 = vpop.f32.mrf.mxu2  ;;  %v904_v50 = vadd.f32 %v903_v46, %v832_v45 }
 0x107   :  { %v785_v49 = vpop.f32.mrf.mxu3  ;;  %v751_v31 = vadd.f32 %v750_v48, %v698_v4 }
 0x108   :  { %v786_v51 = vadd.f32 %v785_v49, %v747_v47 }
 0x10a   :  { %v1101_v33 = vmul.f32 %v786_v51, %v2125_v55 }
 0x10c   :  { %v1106_v26 = vsel %vm1104_vm6, %v1101_v33, 0.0  ;;  %v840_v35 = vpop.f32.mrf.mxu0 }
 0x10d   :  { %v1107_v34 = vadd.f32 %v1106_v26, %v1105_v30  ;;  %v907_v43 = vpop.f32.mrf.mxu1 }
 0x10e   :  { %v754_v54 = vpop.f32.mrf.mxu2  ;;  %v908_v4 = vadd.f32 %v907_v43, %v840_v35 }
 0x10f   :  { %v789_v12 = vpop.f32.mrf.mxu3  ;;  %v755_v3 = vadd.f32 %v754_v54, %v704_v13 }
 0x110   :  { %v790_v32 = vadd.f32 %v789_v12, %v751_v31 }
 0x112   :  { %v1102_v40 = vmul.f32 %v790_v32, %v2127_v14 }
 0x114   :  { %v1108_v28 = vsel %vm1104_vm6, %v1102_v40, 0.0  ;;  %v848_v58 = vpop.f32.mrf.mxu0 }
 0x115   :  { %v1109_v56 = vadd.f32 %v1108_v28, %v1107_v34  ;;  %v911_v61 = vpop.f32.mrf.mxu1 }
 0x116   :  { %v945_v25 = vpop.f32.mrf.mxu2  ;;  %v912_v47 = vadd.f32 %v911_v61, %v848_v58 }
 0x117   :  { %v793_v57 = vpop.f32.mrf.mxu3  ;;  %v946_v36 = vadd.f32 %v945_v25, %v900_v62 }
 0x118   :  { %v794_v15 = vadd.f32 %v793_v57, %v755_v3 }
 0x11a   :  { %v1103_v2 = vmul.f32 %v794_v15, %v2129_v63 }
 0x11c   :  { %v1110_v10 = vsel %vm1104_vm6, %v1103_v2, 0.0  ;;  %v1046_v60 = vpop.f32.mrf.mxu0 }
 0x11d   :  { %v1111_v17 = vadd.f32 %v1110_v10, %v1109_v56  ;;  %v1085_v39 = vpop.f32.mrf.mxu1 }
 0x11e   :  { %v950_v44 = vpop.f32.mrf.mxu2 }
 0x11f   :  { %v989_v41 = vpop.f32.mrf.mxu3  ;;  %v951_v24 = vadd.f32 %v950_v44, %v904_v50  ;;  %v1112_v30 = vrot.slane %v1111_v17, 4 }
 0x120   :  { %v990_v20 = vadd.f32 %v989_v41, %v946_v36 }
 0x121   :  { %v1113_v31 = vadd.f32 %v1112_v30, %v1111_v17 }
 0x122   :  { %v1047_v18 = vadd.f32 %v1046_v60, %v990_v20 }
 0x123   :  { %v1114_v53 = vrot.slane %v1113_v31, 2 }
 0x124   :  { %v1050_v52 = vpop.f32.mrf.mxu0  ;;  %v1086_v27 = vadd.f32 %v1085_v39, %v1047_v18 }
 0x125   :  { %v1089_v59 = vpop.f32.mrf.mxu1  ;;  %v1115_v13 = vadd.f32 %v1114_v53, %v1113_v31 }
 0x126   :  { %v955_v8 = vpop.f32.mrf.mxu2  ;;  %v1118_v5 = vmul.f32 %v1086_v27, %v2123_v23 }
 0x127   :  { %v995_v0 = vpop.f32.mrf.mxu3  ;;  %v956_v9 = vadd.f32 %v955_v8, %v908_v4  ;;  %v1116_v56 = vrot.slane %v1115_v13, 1 }
 0x128   :  { %v996_v19 = vadd.f32 %v995_v0, %v951_v24  ;;  %v1122_v29 = vsel %vm1104_vm6, %v1118_v5, 0.0 }
 0x129   :  { %v1117_v3 = vadd.f32 %v1116_v56, %v1115_v13 }
 0x12a   :  { %v1051_v1 = vadd.f32 %v1050_v52, %v996_v19 }
 0x12c   :  { %v1090_v6 = vadd.f32 %v1089_v59, %v1051_v1  ;;  %v1054_v7 = vpop.f32.mrf.mxu0 }
 0x12d   :  { %v1093_v21 = vpop.f32.mrf.mxu1 }
 0x12e   :  { %v1119_v16 = vmul.f32 %v1090_v6, %v2125_v55  ;;  %v960_v46 = vpop.f32.mrf.mxu2 }
 0x12f   :  { %v1001_v11 = vpop.f32.mrf.mxu3  ;;  %v961_v49 = vadd.f32 %v960_v46, %v912_v47 }
 0x130   :  { %v1123_v37 = vsel %vm1104_vm6, %v1119_v16, 0.0  ;;  %v1002_v38 = vadd.f32 %v1001_v11, %v956_v9 }
 0x131   :  { %v1124_v42 = vadd.f32 %v1123_v37, %v1122_v29 }
 0x132   :  { %v1055_v45 = vadd.f32 %v1054_v7, %v1002_v38 }
 0x134   :  { %v1094_v48 = vadd.f32 %v1093_v21, %v1055_v45  ;;  %v1058_v33 = vpop.f32.mrf.mxu0 }
 0x135   :  { %v1097_v34 = vpop.f32.mrf.mxu1 }
 0x136   :  { %v1120_v23 = vmul.f32 %v1094_v48, %v2127_v14 }
 0x137   :  { %v1007_v51 = vpop.f32.mrf.mxu3 }
 0x138   :  { %v1125_v22 = vsel %vm1104_vm6, %v1120_v23, 0.0  ;;  %v1008_v55 = vadd.f32 %v1007_v51, %v961_v49 }
 0x139   :  { %v1126_v26 = vadd.f32 %v1125_v22, %v1124_v42 }
 0x13a   :  { %v1059_v35 = vadd.f32 %v1058_v33, %v1008_v55 }
 0x13c   :  { %v1098_v43 = vadd.f32 %v1097_v34, %v1059_v35 }
 0x13e   :  { %v1121_v54 = vmul.f32 %v1098_v43, %v2129_v63 }
 0x140   :  { %v1127_v12 = vsel %vm1104_vm6, %v1121_v54, 0.0 }
 0x141   :  { %v1128_v32 = vadd.f32 %v1127_v12, %v1126_v26 }
 0x143   :  { %v1129_v40 = vrot.slane %v1128_v32, 4 }
 0x145   :  { %v1130_v14 = vadd.f32 %v1129_v40, %v1128_v32 }
 0x147   :  { %v1131_v28 = vrot.slane %v1130_v14, 2 }
 0x149   :  { %v1132_v58 = vadd.f32 %v1131_v28, %v1130_v14 }
 0x14b   :  { %v1133_v61 = vrot.slane %v1132_v58, 1 }
 0x14d   :  { %v1134_v25 = vadd.f32 %v1133_v61, %v1132_v58 }
 0x14f   :  { %v1136_v57 = vsel %vm1135_vm7, %v1117_v3, %v1134_v25 }
 0x150   :  { %v1256_v15 = vmul.f32 -1.442695, %v1136_v57 }
 0x152   :  { %1283 = vpow2.f32 %v1256_v15 }
 0x158   :  { %v1284_v2 = vpop.eup %1283 }
 0x159   :  { %v1140_v62 = vadd.f32 1.0, %v1284_v2 }
 0x15b   :  { %1285 = vrcp.f32 %v1140_v62  ;;  %v1152_v60 = vand.u32 2147483648, %v1140_v62  ;;  %v1150_v36 = vand.u32 2147483647, %v1140_v62  ;;  %vm1146_vm9 = vweird.f32 %v1140_v62 }
 0x15d   :  { %v1153_v41 = vor.u32 1.1754944e-38, %v1152_v60  ;;  %vm1151_vm12 = vcmp.eq.f32.partialorder %v1150_v36, 8.507059e+37 }
 0x161   :  { %v1286_v63 = vpop.eup %1285 }
 0x162   :  { %v1142_v10 = vmul.f32 %v1286_v63, %v1140_v62  ;;  %vm1147_vm8 = vweird.f32 %v1286_v63 }
 0x163   :  { %vm1148_vm10 = vmor %vm1146_vm9, %vm1147_vm8 }
 0x164   :  { %v1143_v17 = vsub.f32 1.0, %v1142_v10 }
 0x166   :  { %v1144_v39 = vmul.f32 %v1286_v63, %v1143_v17 }
 0x168   :  { %v1145_v44 = vadd.f32 %v1286_v63, %v1144_v39 }
 0x16a   :  { %v1149_v20 = vsel %vm1148_vm10, %v1286_v63, %v1145_v44 }
 0x16b   :  { %v1154_v50 = vsel %vm1151_vm12, %v1153_v41, %v1149_v20 }
 0x16c   :  { %1157 = vst.msk [vmem:[#allocation7] sm:$0x3] %vm1156_vm11, %v1154_v50 }
 0x16d   :  { %1168 = dma.vmem_to_hbm [thread:$0]  %s1164_s7, 32, %s1166_s10, [#allocation4]  }
 0x16e   :  { %1363 = dma.done.wait [#allocation4], 32  }
 0x16f   :  { %1364 = vsyncadd [#allocation4], 4294967264 }
 0x170   :  { %1173 = vsyncpa [#allocation3], 1 }
 0x171   :  { %1174 = vsyncpa [#allocation6], 1 }
 0x172   :  { %1175 = vsyncpa [#allocation4], 1 }

</bundles_post_ra>
